<compile_context>
chip_gen: v7x
topology: tpu7x:2x2x1
jax: 0.10.0
libtpu: 0.0.40
codegen_flags: <defaults>
</compile_context>

<pallas_src>
import functools

import jax
import jax.numpy as jnp
from jax.experimental import pallas as pl
from jax.experimental.pallas import tpu as pltpu

HIDDEN_SIZE = 24
LEAKY_SLOPE = 0.01  # torch.nn.LeakyReLU default negative_slope


def _daily_linear_kernel(x_ref, we_ref, be_ref, wl_ref, bl_ref, seq_ref, o_ref,
                         *, x_len, y_len):
    """Single-invocation body (one grid step per batch tile).

    x_ref  : (L, Bt, F)   concatenated (energy - seq_last, time) features, time-major
    we_ref : (F, H)       embedding weight (transposed)
    be_ref : (1, H)       embedding bias
    wl_ref : (L, H, O)    big Linear weight, transposed + split per time step
    bl_ref : (1, O)       big Linear bias
    seq_ref: (Bt, P)      seq_last
    o_ref  : (Bt, O)      output block
    """
    we = we_ref[...]          # loaded once, resident in vregs/VMEM
    be = be_ref[...]

    def step(l):
        h = jnp.dot(x_ref[l], we, preferred_element_type=jnp.float32) + be
        h = jnp.where(h > 0, h, LEAKY_SLOPE * h)          # LeakyReLU
        return jnp.dot(h, wl_ref[l], preferred_element_type=jnp.float32)

    acc = step(0)
    for l in range(1, x_len):                              # static unroll (small L)
        acc = acc + step(l)

    # out = acc + b_lin + seq_last broadcast over the y_len forecast steps.
    seq_tiled = jnp.concatenate([seq_ref[...]] * y_len, axis=-1)   # (Bt, O)
    o_ref[...] = (acc + bl_ref[...] + seq_tiled).astype(o_ref.dtype)


def daily_linear_forward(energy_xs, time_xs, time_ys, params, *, batch_tile=256):
    """energy_xs: (B, x_len, period), time_xs: (B, x_len, time_size).
    time_ys is accepted (to match the PyTorch signature) but unused."""
    del time_ys
    B, x_len, period = energy_xs.shape
    time_size = time_xs.shape[-1]
    F = period + time_size
    H = HIDDEN_SIZE
    assert period == H, "original module only type-checks when period == HIDDEN_SIZE"

    w_emb, b_emb = params["w_emb"], params["b_emb"]      # (H, F), (H,)
    w_lin, b_lin = params["w_lin"], params["b_lin"]      # (Yl*P, L*P), (Yl*P,)
    O = w_lin.shape[0]
    y_len = O // period

    # --- glue (plain JAX): slicing / concat / transposes / parameter reshapes ---
    seq_last = energy_xs[:, -1, :]                                        # (B, P)
    x_cat = jnp.concatenate([energy_xs - seq_last[:, None, :], time_xs], axis=-1)
    x_cat = jnp.transpose(x_cat, (1, 0, 2))                               # (L, B, F)

    w_emb_t = jnp.transpose(w_emb)                                        # (F, H)
    b_emb2 = b_emb[None, :]                                               # (1, H)
    w_lin_t3 = jnp.transpose(w_lin).reshape(x_len, H, O)                  # (L, H, O)
    b_lin2 = b_lin[None, :]                                               # (1, O)

    bt = min(B, batch_tile)                 # batch tile (full batch at small B)
    grid = (pl.cdiv(B, bt),)

    kernel = functools.partial(_daily_linear_kernel, x_len=x_len, y_len=y_len)

    out_flat = pl.pallas_call(
        kernel,
        out_shape=jax.ShapeDtypeStruct((B, O), energy_xs.dtype),
        grid_spec=pltpu.PrefetchScalarGridSpec(
            num_scalar_prefetch=0,
            grid=grid,
            in_specs=[
                pl.BlockSpec((x_len, bt, F), lambda b: (0, b, 0)),  # features
                pl.BlockSpec((F, H), lambda b: (0, 0)),             # emb weight (resident)
                pl.BlockSpec((1, H), lambda b: (0, 0)),             # emb bias (resident)
                pl.BlockSpec((x_len, H, O), lambda b: (0, 0, 0)),   # big weight (resident)
                pl.BlockSpec((1, O), lambda b: (0, 0)),             # big bias (resident)
                pl.BlockSpec((bt, period), lambda b: (b, 0)),       # seq_last
            ],
            out_specs=pl.BlockSpec((bt, O), lambda b: (b, 0)),
        ),
        compiler_params=pltpu.CompilerParams(
            dimension_semantics=("parallel",)),   # batch axis -> megacore on v7x
    )(x_cat, w_emb_t, b_emb2, w_lin_t3, b_lin2, seq_last)

    return out_flat.reshape(B, y_len, period)


def _reference_forward(energy_xs, time_xs, params):
    """Pure-JAX reference mirroring the PyTorch forward."""
    B, x_len, period = energy_xs.shape
    seq_last = energy_xs[:, -1:, :]
    x = jnp.concatenate([energy_xs - seq_last, time_xs], axis=-1)
    h = x @ params["w_emb"].T + params["b_emb"]
    h = jnp.where(h > 0, h, LEAKY_SLOPE * h)          # (B, L, H)
    h_flat = h.reshape(B, x_len * HIDDEN_SIZE)        # concat over dim=1 of per-step embeddings
    y = h_flat @ params["w_lin"].T + params["b_lin"]  # (B, Yl*P)
    y_len = params["w_lin"].shape[0] // period
    return y.reshape(B, y_len, period) + seq_last


def init_params(key, x_len, y_len, period, time_size):
    """Deterministic init mirroring torch.nn.Linear default (U[-1/sqrt(fan_in), +])."""
    k1, k2, k3, k4 = jax.random.split(key, 4)
    f_in_emb = period + time_size
    f_in_lin = x_len * period
    lim_e = 1.0 / jnp.sqrt(jnp.float32(f_in_emb))
    lim_l = 1.0 / jnp.sqrt(jnp.float32(f_in_lin))
    return {
        "w_emb": jax.random.uniform(k1, (HIDDEN_SIZE, f_in_emb), jnp.float32, -lim_e, lim_e),
        "b_emb": jax.random.uniform(k2, (HIDDEN_SIZE,), jnp.float32, -lim_e, lim_e),
        "w_lin": jax.random.uniform(k3, (y_len * period, f_in_lin), jnp.float32, -lim_l, lim_l),
        "b_lin": jax.random.uniform(k4, (y_len * period,), jnp.float32, -lim_l, lim_l),
    }


if __name__ == "__main__":
    B, x_len, y_len, period, time_size = 2, 8, 4, HIDDEN_SIZE, 8

    key = jax.random.PRNGKey(0)
    kp, ke, kt, ky = jax.random.split(key, 4)
    params = init_params(kp, x_len, y_len, period, time_size)

    energy_xs = jax.random.normal(ke, (B, x_len, period), jnp.float32)
    time_xs = jax.random.normal(kt, (B, x_len, time_size), jnp.float32)
    time_ys = jax.random.normal(ky, (B, y_len, time_size), jnp.float32)  # unused (matches torch API)

    out = daily_linear_forward(energy_xs, time_xs, time_ys, params)
    out = jax.block_until_ready(out)

    ref = _reference_forward(energy_xs, time_xs, params)
    assert out.shape == (B, y_len, period)
    assert jnp.allclose(out, ref, atol=1e-4, rtol=1e-4), "mismatch vs reference"

    print("KERNEL_OK")
</pallas_src>

<mosaic_0001>
module attributes {stable_mosaic.version = 11 : i64} {
  func.func @_daily_linear_kernel(%arg0: i32, %arg1: memref<8x2x32xf32, #tpu.memory_space<vmem>>, %arg2: memref<32x24xf32, #tpu.memory_space<vmem>>, %arg3: memref<1x24xf32, #tpu.memory_space<vmem>>, %arg4: memref<8x24x96xf32, #tpu.memory_space<vmem>>, %arg5: memref<1x96xf32, #tpu.memory_space<vmem>>, %arg6: memref<2x24xf32, #tpu.memory_space<vmem>>, %arg7: memref<2x96xf32, #tpu.memory_space<vmem>>) attributes {dimension_semantics = [#tpu.dimension_semantics<parallel>], iteration_bounds = array<i64: 1>, scalar_prefetch = 0 : i64, scratch_operands = 0 : i64, tpu.core_type = #tpu.core_type<tc>, window_params = [{transform_indices = @transform_0, window_bounds = array<i64: 8, 2, 32>}, {pipeline_mode = #tpu.pipeline_mode<synchronous>, transform_indices = @transform_1, window_bounds = array<i64: 32, 24>}, {pipeline_mode = #tpu.pipeline_mode<synchronous>, transform_indices = @transform_2, window_bounds = array<i64: 1, 24>}, {pipeline_mode = #tpu.pipeline_mode<synchronous>, transform_indices = @transform_3, window_bounds = array<i64: 8, 24, 96>}, {pipeline_mode = #tpu.pipeline_mode<synchronous>, transform_indices = @transform_4, window_bounds = array<i64: 1, 96>}, {transform_indices = @transform_5, window_bounds = array<i64: 2, 24>}, {transform_indices = @transform_6, window_bounds = array<i64: 2, 96>}]} {
    %c0 = arith.constant 0 : index
    %c0_0 = arith.constant 0 : index
    %0 = vector.load %arg2[%c0, %c0_0] : memref<32x24xf32, #tpu.memory_space<vmem>>, vector<32x24xf32>
    %c0_1 = arith.constant 0 : index
    %c0_2 = arith.constant 0 : index
    %1 = vector.load %arg3[%c0_1, %c0_2] : memref<1x24xf32, #tpu.memory_space<vmem>>, vector<1x24xf32>
    %c0_3 = arith.constant 0 : index
    %c0_4 = arith.constant 0 : index
    %c0_5 = arith.constant 0 : index
    %2 = vector.load %arg1[%c0_3, %c0_4, %c0_5] : memref<8x2x32xf32, #tpu.memory_space<vmem>>, vector<1x2x32xf32>
    %3 = vector.shape_cast %2 : vector<1x2x32xf32> to vector<2x32xf32>
    %cst = arith.constant dense<0.000000e+00> : vector<2x24xf32>
    %4 = tpu.matmul %3, %0, %cst {dimension_numbers = #tpu.dot_dimension_numbers<[1], [0], [0], [1], [0, 0, 1, 1], [], []>} : vector<2x32xf32>, vector<32x24xf32>, vector<2x24xf32> -> vector<2x24xf32>
    %5 = vector.broadcast %1 : vector<1x24xf32> to vector<2x24xf32>
    %6 = arith.addf %4, %5 : vector<2x24xf32>
    %cst_6 = arith.constant 0.000000e+00 : f32
    %7 = vector.broadcast %cst_6 : f32 to vector<2x24xf32>
    %8 = arith.cmpf ogt, %6, %7 : vector<2x24xf32>
    %cst_7 = arith.constant 0.00999999977 : f32
    %9 = vector.broadcast %cst_7 : f32 to vector<2x24xf32>
    %10 = arith.mulf %9, %6 : vector<2x24xf32>
    %11 = arith.select %8, %6, %10 : vector<2x24xi1>, vector<2x24xf32>
    %c0_8 = arith.constant 0 : index
    %c0_9 = arith.constant 0 : index
    %c0_10 = arith.constant 0 : index
    %12 = vector.load %arg4[%c0_8, %c0_9, %c0_10] : memref<8x24x96xf32, #tpu.memory_space<vmem>>, vector<1x24x96xf32>
    %13 = vector.shape_cast %12 : vector<1x24x96xf32> to vector<24x96xf32>
    %cst_11 = arith.constant dense<0.000000e+00> : vector<2x96xf32>
    %14 = tpu.matmul %11, %13, %cst_11 {dimension_numbers = #tpu.dot_dimension_numbers<[1], [0], [0], [1], [0, 0, 1, 1], [], []>} : vector<2x24xf32>, vector<24x96xf32>, vector<2x96xf32> -> vector<2x96xf32>
    %c1 = arith.constant 1 : index
    %c0_12 = arith.constant 0 : index
    %c0_13 = arith.constant 0 : index
    %15 = vector.load %arg1[%c1, %c0_12, %c0_13] : memref<8x2x32xf32, #tpu.memory_space<vmem>>, vector<1x2x32xf32>
    %16 = vector.shape_cast %15 : vector<1x2x32xf32> to vector<2x32xf32>
    %cst_14 = arith.constant dense<0.000000e+00> : vector<2x24xf32>
    %17 = tpu.matmul %16, %0, %cst_14 {dimension_numbers = #tpu.dot_dimension_numbers<[1], [0], [0], [1], [0, 0, 1, 1], [], []>} : vector<2x32xf32>, vector<32x24xf32>, vector<2x24xf32> -> vector<2x24xf32>
    %18 = vector.broadcast %1 : vector<1x24xf32> to vector<2x24xf32>
    %19 = arith.addf %17, %18 : vector<2x24xf32>
    %cst_15 = arith.constant 0.000000e+00 : f32
    %20 = vector.broadcast %cst_15 : f32 to vector<2x24xf32>
    %21 = arith.cmpf ogt, %19, %20 : vector<2x24xf32>
    %cst_16 = arith.constant 0.00999999977 : f32
    %22 = vector.broadcast %cst_16 : f32 to vector<2x24xf32>
    %23 = arith.mulf %22, %19 : vector<2x24xf32>
    %24 = arith.select %21, %19, %23 : vector<2x24xi1>, vector<2x24xf32>
    %c1_17 = arith.constant 1 : index
    %c0_18 = arith.constant 0 : index
    %c0_19 = arith.constant 0 : index
    %25 = vector.load %arg4[%c1_17, %c0_18, %c0_19] : memref<8x24x96xf32, #tpu.memory_space<vmem>>, vector<1x24x96xf32>
    %26 = vector.shape_cast %25 : vector<1x24x96xf32> to vector<24x96xf32>
    %cst_20 = arith.constant dense<0.000000e+00> : vector<2x96xf32>
    %27 = tpu.matmul %24, %26, %cst_20 {dimension_numbers = #tpu.dot_dimension_numbers<[1], [0], [0], [1], [0, 0, 1, 1], [], []>} : vector<2x24xf32>, vector<24x96xf32>, vector<2x96xf32> -> vector<2x96xf32>
    %28 = arith.addf %14, %27 : vector<2x96xf32>
    %c2 = arith.constant 2 : index
    %c0_21 = arith.constant 0 : index
    %c0_22 = arith.constant 0 : index
    %29 = vector.load %arg1[%c2, %c0_21, %c0_22] : memref<8x2x32xf32, #tpu.memory_space<vmem>>, vector<1x2x32xf32>
    %30 = vector.shape_cast %29 : vector<1x2x32xf32> to vector<2x32xf32>
    %cst_23 = arith.constant dense<0.000000e+00> : vector<2x24xf32>
    %31 = tpu.matmul %30, %0, %cst_23 {dimension_numbers = #tpu.dot_dimension_numbers<[1], [0], [0], [1], [0, 0, 1, 1], [], []>} : vector<2x32xf32>, vector<32x24xf32>, vector<2x24xf32> -> vector<2x24xf32>
    %32 = vector.broadcast %1 : vector<1x24xf32> to vector<2x24xf32>
    %33 = arith.addf %31, %32 : vector<2x24xf32>
    %cst_24 = arith.constant 0.000000e+00 : f32
    %34 = vector.broadcast %cst_24 : f32 to vector<2x24xf32>
    %35 = arith.cmpf ogt, %33, %34 : vector<2x24xf32>
    %cst_25 = arith.constant 0.00999999977 : f32
    %36 = vector.broadcast %cst_25 : f32 to vector<2x24xf32>
    %37 = arith.mulf %36, %33 : vector<2x24xf32>
    %38 = arith.select %35, %33, %37 : vector<2x24xi1>, vector<2x24xf32>
    %c2_26 = arith.constant 2 : index
    %c0_27 = arith.constant 0 : index
    %c0_28 = arith.constant 0 : index
    %39 = vector.load %arg4[%c2_26, %c0_27, %c0_28] : memref<8x24x96xf32, #tpu.memory_space<vmem>>, vector<1x24x96xf32>
    %40 = vector.shape_cast %39 : vector<1x24x96xf32> to vector<24x96xf32>
    %cst_29 = arith.constant dense<0.000000e+00> : vector<2x96xf32>
    %41 = tpu.matmul %38, %40, %cst_29 {dimension_numbers = #tpu.dot_dimension_numbers<[1], [0], [0], [1], [0, 0, 1, 1], [], []>} : vector<2x24xf32>, vector<24x96xf32>, vector<2x96xf32> -> vector<2x96xf32>
    %42 = arith.addf %28, %41 : vector<2x96xf32>
    %c3 = arith.constant 3 : index
    %c0_30 = arith.constant 0 : index
    %c0_31 = arith.constant 0 : index
    %43 = vector.load %arg1[%c3, %c0_30, %c0_31] : memref<8x2x32xf32, #tpu.memory_space<vmem>>, vector<1x2x32xf32>
    %44 = vector.shape_cast %43 : vector<1x2x32xf32> to vector<2x32xf32>
    %cst_32 = arith.constant dense<0.000000e+00> : vector<2x24xf32>
    %45 = tpu.matmul %44, %0, %cst_32 {dimension_numbers = #tpu.dot_dimension_numbers<[1], [0], [0], [1], [0, 0, 1, 1], [], []>} : vector<2x32xf32>, vector<32x24xf32>, vector<2x24xf32> -> vector<2x24xf32>
    %46 = vector.broadcast %1 : vector<1x24xf32> to vector<2x24xf32>
    %47 = arith.addf %45, %46 : vector<2x24xf32>
    %cst_33 = arith.constant 0.000000e+00 : f32
    %48 = vector.broadcast %cst_33 : f32 to vector<2x24xf32>
    %49 = arith.cmpf ogt, %47, %48 : vector<2x24xf32>
    %cst_34 = arith.constant 0.00999999977 : f32
    %50 = vector.broadcast %cst_34 : f32 to vector<2x24xf32>
    %51 = arith.mulf %50, %47 : vector<2x24xf32>
    %52 = arith.select %49, %47, %51 : vector<2x24xi1>, vector<2x24xf32>
    %c3_35 = arith.constant 3 : index
    %c0_36 = arith.constant 0 : index
    %c0_37 = arith.constant 0 : index
    %53 = vector.load %arg4[%c3_35, %c0_36, %c0_37] : memref<8x24x96xf32, #tpu.memory_space<vmem>>, vector<1x24x96xf32>
    %54 = vector.shape_cast %53 : vector<1x24x96xf32> to vector<24x96xf32>
    %cst_38 = arith.constant dense<0.000000e+00> : vector<2x96xf32>
    %55 = tpu.matmul %52, %54, %cst_38 {dimension_numbers = #tpu.dot_dimension_numbers<[1], [0], [0], [1], [0, 0, 1, 1], [], []>} : vector<2x24xf32>, vector<24x96xf32>, vector<2x96xf32> -> vector<2x96xf32>
    %56 = arith.addf %42, %55 : vector<2x96xf32>
    %c4 = arith.constant 4 : index
    %c0_39 = arith.constant 0 : index
    %c0_40 = arith.constant 0 : index
    %57 = vector.load %arg1[%c4, %c0_39, %c0_40] : memref<8x2x32xf32, #tpu.memory_space<vmem>>, vector<1x2x32xf32>
    %58 = vector.shape_cast %57 : vector<1x2x32xf32> to vector<2x32xf32>
    %cst_41 = arith.constant dense<0.000000e+00> : vector<2x24xf32>
    %59 = tpu.matmul %58, %0, %cst_41 {dimension_numbers = #tpu.dot_dimension_numbers<[1], [0], [0], [1], [0, 0, 1, 1], [], []>} : vector<2x32xf32>, vector<32x24xf32>, vector<2x24xf32> -> vector<2x24xf32>
    %60 = vector.broadcast %1 : vector<1x24xf32> to vector<2x24xf32>
    %61 = arith.addf %59, %60 : vector<2x24xf32>
    %cst_42 = arith.constant 0.000000e+00 : f32
    %62 = vector.broadcast %cst_42 : f32 to vector<2x24xf32>
    %63 = arith.cmpf ogt, %61, %62 : vector<2x24xf32>
    %cst_43 = arith.constant 0.00999999977 : f32
    %64 = vector.broadcast %cst_43 : f32 to vector<2x24xf32>
    %65 = arith.mulf %64, %61 : vector<2x24xf32>
    %66 = arith.select %63, %61, %65 : vector<2x24xi1>, vector<2x24xf32>
    %c4_44 = arith.constant 4 : index
    %c0_45 = arith.constant 0 : index
    %c0_46 = arith.constant 0 : index
    %67 = vector.load %arg4[%c4_44, %c0_45, %c0_46] : memref<8x24x96xf32, #tpu.memory_space<vmem>>, vector<1x24x96xf32>
    %68 = vector.shape_cast %67 : vector<1x24x96xf32> to vector<24x96xf32>
    %cst_47 = arith.constant dense<0.000000e+00> : vector<2x96xf32>
    %69 = tpu.matmul %66, %68, %cst_47 {dimension_numbers = #tpu.dot_dimension_numbers<[1], [0], [0], [1], [0, 0, 1, 1], [], []>} : vector<2x24xf32>, vector<24x96xf32>, vector<2x96xf32> -> vector<2x96xf32>
    %70 = arith.addf %56, %69 : vector<2x96xf32>
    %c5 = arith.constant 5 : index
    %c0_48 = arith.constant 0 : index
    %c0_49 = arith.constant 0 : index
    %71 = vector.load %arg1[%c5, %c0_48, %c0_49] : memref<8x2x32xf32, #tpu.memory_space<vmem>>, vector<1x2x32xf32>
    %72 = vector.shape_cast %71 : vector<1x2x32xf32> to vector<2x32xf32>
    %cst_50 = arith.constant dense<0.000000e+00> : vector<2x24xf32>
    %73 = tpu.matmul %72, %0, %cst_50 {dimension_numbers = #tpu.dot_dimension_numbers<[1], [0], [0], [1], [0, 0, 1, 1], [], []>} : vector<2x32xf32>, vector<32x24xf32>, vector<2x24xf32> -> vector<2x24xf32>
    %74 = vector.broadcast %1 : vector<1x24xf32> to vector<2x24xf32>
    %75 = arith.addf %73, %74 : vector<2x24xf32>
    %cst_51 = arith.constant 0.000000e+00 : f32
    %76 = vector.broadcast %cst_51 : f32 to vector<2x24xf32>
    %77 = arith.cmpf ogt, %75, %76 : vector<2x24xf32>
    %cst_52 = arith.constant 0.00999999977 : f32
    %78 = vector.broadcast %cst_52 : f32 to vector<2x24xf32>
    %79 = arith.mulf %78, %75 : vector<2x24xf32>
    %80 = arith.select %77, %75, %79 : vector<2x24xi1>, vector<2x24xf32>
    %c5_53 = arith.constant 5 : index
    %c0_54 = arith.constant 0 : index
    %c0_55 = arith.constant 0 : index
    %81 = vector.load %arg4[%c5_53, %c0_54, %c0_55] : memref<8x24x96xf32, #tpu.memory_space<vmem>>, vector<1x24x96xf32>
    %82 = vector.shape_cast %81 : vector<1x24x96xf32> to vector<24x96xf32>
    %cst_56 = arith.constant dense<0.000000e+00> : vector<2x96xf32>
    %83 = tpu.matmul %80, %82, %cst_56 {dimension_numbers = #tpu.dot_dimension_numbers<[1], [0], [0], [1], [0, 0, 1, 1], [], []>} : vector<2x24xf32>, vector<24x96xf32>, vector<2x96xf32> -> vector<2x96xf32>
    %84 = arith.addf %70, %83 : vector<2x96xf32>
    %c6 = arith.constant 6 : index
    %c0_57 = arith.constant 0 : index
    %c0_58 = arith.constant 0 : index
    %85 = vector.load %arg1[%c6, %c0_57, %c0_58] : memref<8x2x32xf32, #tpu.memory_space<vmem>>, vector<1x2x32xf32>
    %86 = vector.shape_cast %85 : vector<1x2x32xf32> to vector<2x32xf32>
    %cst_59 = arith.constant dense<0.000000e+00> : vector<2x24xf32>
    %87 = tpu.matmul %86, %0, %cst_59 {dimension_numbers = #tpu.dot_dimension_numbers<[1], [0], [0], [1], [0, 0, 1, 1], [], []>} : vector<2x32xf32>, vector<32x24xf32>, vector<2x24xf32> -> vector<2x24xf32>
    %88 = vector.broadcast %1 : vector<1x24xf32> to vector<2x24xf32>
    %89 = arith.addf %87, %88 : vector<2x24xf32>
    %cst_60 = arith.constant 0.000000e+00 : f32
    %90 = vector.broadcast %cst_60 : f32 to vector<2x24xf32>
    %91 = arith.cmpf ogt, %89, %90 : vector<2x24xf32>
    %cst_61 = arith.constant 0.00999999977 : f32
    %92 = vector.broadcast %cst_61 : f32 to vector<2x24xf32>
    %93 = arith.mulf %92, %89 : vector<2x24xf32>
    %94 = arith.select %91, %89, %93 : vector<2x24xi1>, vector<2x24xf32>
    %c6_62 = arith.constant 6 : index
    %c0_63 = arith.constant 0 : index
    %c0_64 = arith.constant 0 : index
    %95 = vector.load %arg4[%c6_62, %c0_63, %c0_64] : memref<8x24x96xf32, #tpu.memory_space<vmem>>, vector<1x24x96xf32>
    %96 = vector.shape_cast %95 : vector<1x24x96xf32> to vector<24x96xf32>
    %cst_65 = arith.constant dense<0.000000e+00> : vector<2x96xf32>
    %97 = tpu.matmul %94, %96, %cst_65 {dimension_numbers = #tpu.dot_dimension_numbers<[1], [0], [0], [1], [0, 0, 1, 1], [], []>} : vector<2x24xf32>, vector<24x96xf32>, vector<2x96xf32> -> vector<2x96xf32>
    %98 = arith.addf %84, %97 : vector<2x96xf32>
    %c7 = arith.constant 7 : index
    %c0_66 = arith.constant 0 : index
    %c0_67 = arith.constant 0 : index
    %99 = vector.load %arg1[%c7, %c0_66, %c0_67] : memref<8x2x32xf32, #tpu.memory_space<vmem>>, vector<1x2x32xf32>
    %100 = vector.shape_cast %99 : vector<1x2x32xf32> to vector<2x32xf32>
    %cst_68 = arith.constant dense<0.000000e+00> : vector<2x24xf32>
    %101 = tpu.matmul %100, %0, %cst_68 {dimension_numbers = #tpu.dot_dimension_numbers<[1], [0], [0], [1], [0, 0, 1, 1], [], []>} : vector<2x32xf32>, vector<32x24xf32>, vector<2x24xf32> -> vector<2x24xf32>
    %102 = vector.broadcast %1 : vector<1x24xf32> to vector<2x24xf32>
    %103 = arith.addf %101, %102 : vector<2x24xf32>
    %cst_69 = arith.constant 0.000000e+00 : f32
    %104 = vector.broadcast %cst_69 : f32 to vector<2x24xf32>
    %105 = arith.cmpf ogt, %103, %104 : vector<2x24xf32>
    %cst_70 = arith.constant 0.00999999977 : f32
    %106 = vector.broadcast %cst_70 : f32 to vector<2x24xf32>
    %107 = arith.mulf %106, %103 : vector<2x24xf32>
    %108 = arith.select %105, %103, %107 : vector<2x24xi1>, vector<2x24xf32>
    %c7_71 = arith.constant 7 : index
    %c0_72 = arith.constant 0 : index
    %c0_73 = arith.constant 0 : index
    %109 = vector.load %arg4[%c7_71, %c0_72, %c0_73] : memref<8x24x96xf32, #tpu.memory_space<vmem>>, vector<1x24x96xf32>
    %110 = vector.shape_cast %109 : vector<1x24x96xf32> to vector<24x96xf32>
    %cst_74 = arith.constant dense<0.000000e+00> : vector<2x96xf32>
    %111 = tpu.matmul %108, %110, %cst_74 {dimension_numbers = #tpu.dot_dimension_numbers<[1], [0], [0], [1], [0, 0, 1, 1], [], []>} : vector<2x24xf32>, vector<24x96xf32>, vector<2x96xf32> -> vector<2x96xf32>
    %112 = arith.addf %98, %111 : vector<2x96xf32>
    %c0_75 = arith.constant 0 : index
    %c0_76 = arith.constant 0 : index
    %113 = vector.load %arg6[%c0_75, %c0_76] : memref<2x24xf32, #tpu.memory_space<vmem>>, vector<2x24xf32>
    %114 = tpu.concatenate %113, %113, %113, %113 in 1 : vector<2x24xf32>, vector<2x24xf32>, vector<2x24xf32>, vector<2x24xf32> -> vector<2x96xf32>
    %c0_77 = arith.constant 0 : index
    %c0_78 = arith.constant 0 : index
    %115 = vector.load %arg5[%c0_77, %c0_78] : memref<1x96xf32, #tpu.memory_space<vmem>>, vector<1x96xf32>
    %116 = vector.broadcast %115 : vector<1x96xf32> to vector<2x96xf32>
    %117 = arith.addf %112, %116 : vector<2x96xf32>
    %118 = arith.addf %117, %114 : vector<2x96xf32>
    %c0_79 = arith.constant 0 : index
    %c0_80 = arith.constant 0 : index
    %119 = vector.load %arg7[%c0_79, %c0_80] : memref<2x96xf32, #tpu.memory_space<vmem>>, vector<2x96xf32>
    tpu.vector_store %arg7[%c0_79, %c0_80], %118 {strides = array<i32>} : memref<2x96xf32, #tpu.memory_space<vmem>>, vector<2x96xf32>,
    return
  }
  func.func @transform_0(%arg0: i32) -> (i32, i32, i32) {
    %c0_i32 = arith.constant 0 : i32
    %c0_i32_0 = arith.constant 0 : i32
    %c0_i32_1 = arith.constant 0 : i32
    return %c0_i32, %arg0, %c0_i32_0 : i32, i32, i32
  }
  func.func @transform_1(%arg0: i32) -> (i32, i32) {
    %c0_i32 = arith.constant 0 : i32
    %c0_i32_0 = arith.constant 0 : i32
    %c0_i32_1 = arith.constant 0 : i32
    return %c0_i32, %c0_i32_0 : i32, i32
  }
  func.func @transform_2(%arg0: i32) -> (i32, i32) {
    %c0_i32 = arith.constant 0 : i32
    %c0_i32_0 = arith.constant 0 : i32
    %c0_i32_1 = arith.constant 0 : i32
    return %c0_i32, %c0_i32_0 : i32, i32
  }
  func.func @transform_3(%arg0: i32) -> (i32, i32, i32) {
    %c0_i32 = arith.constant 0 : i32
    %c0_i32_0 = arith.constant 0 : i32
    %c0_i32_1 = arith.constant 0 : i32
    %c0_i32_2 = arith.constant 0 : i32
    return %c0_i32, %c0_i32_0, %c0_i32_1 : i32, i32, i32
  }
  func.func @transform_4(%arg0: i32) -> (i32, i32) {
    %c0_i32 = arith.constant 0 : i32
    %c0_i32_0 = arith.constant 0 : i32
    %c0_i32_1 = arith.constant 0 : i32
    return %c0_i32, %c0_i32_0 : i32, i32
  }
  func.func @transform_5(%arg0: i32) -> (i32, i32) {
    %c0_i32 = arith.constant 0 : i32
    %c0_i32_0 = arith.constant 0 : i32
    return %arg0, %c0_i32 : i32, i32
  }
  func.func @transform_6(%arg0: i32) -> (i32, i32) {
    %c0_i32 = arith.constant 0 : i32
    %c0_i32_0 = arith.constant 0 : i32
    return %arg0, %c0_i32 : i32, i32
  }
}

</mosaic_0001>

<bundles_post_ra>
// kernel: tpu_custom_call.1
= control target key start
LH: loop header
LB: loop body
LE: loop exit
PB: predicated region body
PF: predicated region fallthrough
CT: control target
= control target key end

     0   :  { %11 = vsyncpa [#allocation3], 0  ;;  %s1949_s0 = inlined_call_operand.vmem [shape: f32[8,2,32], index: 0, kind: input, shape index: {}]   ;;  %s1950_s1 = inlined_call_operand.vmem [shape: f32[32,24], index: 1, kind: input, shape index: {}]   ;;  %s1951_s2 = inlined_call_operand.vmem [shape: f32[1,24], index: 2, kind: input, shape index: {}]   ;;  %s1952_s3 = inlined_call_operand.hbm [shape: f32[8,24,96], index: 3, kind: input, shape index: {}]   ;;  %s1953_s4 = inlined_call_operand.vmem [shape: f32[1,96], index: 4, kind: input, shape index: {}]   ;;  %s1954_s5 = inlined_call_operand.vmem [shape: f32[2,24], index: 5, kind: input, shape index: {}]   ;;  %s1955_s6 = inlined_call_operand.hbm [shape: f32[2,96], index: 6, kind: output, shape index: {}]  }
   0x1   :  { %12 = vsyncpa [#allocation4], 0  ;;  %s1724_s21 = smov [#allocation2]   ;;  %s1676_s25 = scalar_lea.hbm %s1952_s3, 3072 }
   0x2   :  { %s24_s22 = sshll.u32 %s1724_s21, 4  ;;  %p1677_p0 = scmp.ne.s32.totalorder %s1952_s3, %s1676_s25  ;;  %s25_s22 = int_to_ptr.vmem [resolvable:$true] %s24_s22 }
   0x3   :  { %p1680_p1 = scmp.lt.u32.totalorder %s1676_s25, %s1952_s3 }
   0x5   :  { %p1682_p2 = pnand %p1680_p1, %p1677_p0 }
   0x7   :  { %1685 = shalt.err (!%p1682_p2)
}
   0x8   :  { %s1686_s30 = scalar_lea.vmem %s25_s22, 3072  ;;  %p1691_p4 = scmp.lt.s32.totalorder %s25_s22, %s25_s22 }
   0x9   :  { %p1687_p3 = scmp.ne.s32.totalorder %s25_s22, %s1686_s30  ;;  %p1692_p5 = scmp.lt.s32.totalorder %s1686_s30, %s1686_s30 }
   0xb   :  { %p1693_p6 = por %p1692_p5, %p1691_p4 }
   0xd   :  { %p1694_p7 = pnand %p1693_p6, %p1687_p3 }
   0xf   :  { %1697 = shalt.err (!%p1694_p7)
}
  0x10   :  { %s1725_s7 = smov 128   ;;  %s1726_s8 = smov 8  }
  0x11   :  { %30 = dma.hbm_to_vmem [thread:$0]  %s1952_s3, 3072, %s25_s22, [#allocation3], %s1725_s7, %s1725_s7, %s1726_s8  }
  0x12   :  { %1720 = dma.done.wait [#allocation3], 3072  }
  0x13   :  { %1721 = vsyncadd [#allocation3], 4294964224  ;;  %v1727_v0 = vmov 0.0|0.0   ;;  %vm1728_vm0 = vmmov 0   ;;  %v1729_v1 = vmov 0.0   ;;  %v38_v2 = vld [vmem:[%s1950_s1] sm:$0xff] }
  0x14   :  { %1594 = vmatprep.subr.bf16.mxu0 %v1727_v0  ;;  %1600 = vmatprep.subr.bf16.mxu1 %v1727_v0  ;;  %v39_v3 = vld [vmem:[%s1950_s1 + $0x8] sm:$0xff]  ;;  %v40_v4 = vld [vmem:[%s1950_s1 + $0x10] sm:$0xff]  ;;  %v41_v6 = vld [vmem:[%s1950_s1 + $0x18] sm:$0xff]  ;;  %vm50_vm1 = vcmask 261120   ;;  %vm212_vm2 = vcmask 195584   ;;  %s1730_s12 = smov 24  }
  0x15   :  { %1442 = vmatprep.mubr.msk.f32.mxu0 %vm1728_vm0, %v1729_v1  ;;  %1453 = vmatprep.mubr.msk.f32.mxu1 %vm1728_vm0, %v1729_v1  ;;  %v1796_v5 = vpack.c.bf16 %v39_v3, %v38_v2  ;;  %v1803_v7 = vpack.c.bf16 %v41_v6, %v40_v4  ;;  %v43_v8 = vld [vmem:[%s1949_s0] sm:$0x3]  ;;  %v1339_v9 = vld [vmem:[%s1949_s0 + $0x2] sm:$0x3]  ;;  %v209_v10 = vld [vmem:[#allocation2 + $0x18] sm:$0xff]  ;;  %s1731_s3 = smov 72  }
  0x16   :  { %v210_v11 = vld [vmem:[#allocation2 + $0x20] sm:$0xff]  ;;  %v128_v14 = vld [vmem:[#allocation2 + $0x8] sm:$0xff]  ;;  %v129_v17 = vld [vmem:[#allocation2 + $0x10] sm:$0xff]  ;;  %s1732_s13 = smov 48   ;;  %vm1307_vm11 = vcmask 392192   ;;  %vm1309_vm12 = vcmask 588800  }
  0x17   :  { %1596 = vmatpush3.bf16.msra.mxu0 %v1796_v5  ;;  %1602 = vmatpush3.bf16.msra.mxu1 %v1796_v5  ;;  %v1607_v12 = vpack.c.bf16 %v210_v11, %v209_v10  ;;  %v127_v13 = vld [vmem:[#allocation2] sm:$0xff]  ;;  %v211_v16 = vld [vmem:[#allocation2 + $0x28] sm:$0xff]  ;;  %v438_v30 = vld [vmem:[#allocation2 + $0x30] sm:$0xff]  ;;  %s1733_s14 = smov [#allocation5]   ;;  %vm1320_vm13 = vcmask 779264  }
  0x18   :  { %1597 = vmatprep.subr.bf16.mxu0 %v1727_v0  ;;  %1603 = vmatprep.subr.bf16.mxu1 %v1727_v0  ;;  %v1610_v15 = vpack.c.bf16 %v128_v14, %v127_v13  ;;  %v1830_v18 = vld [vmem:[%s1951_s2] ss:$0 sm:$0xff]  ;;  %v1343_v29 = vld [vmem:[%s1949_s0 + $0x4] sm:$0x3]  ;;  %v439_v31 = vld [vmem:[#allocation2 + $0x38] sm:$0xff]  ;;  %s1328_s15 = sshll.u32 %s1733_s14, 4  ;;  %s1329_s15 = int_to_ptr.vmem [resolvable:$true] %s1328_s15 }
  0x19   :  { %v1619_v32 = vpack.c.bf16 %v439_v31, %v438_v30  ;;  %v440_v33 = vld [vmem:[#allocation2 + $0x40] sm:$0xff]  ;;  %v594_v45 = vld [vmem:[#allocation2 + $0x48] sm:$0xff]  ;;  %v595_v46 = vld [vmem:[#allocation2 + $0x50] sm:$0xff]  ;;  %s1698_s16 = scalar_lea.vmem %s1329_s15, 32  ;;  %p1703_p9 = scmp.lt.s32.totalorder %s1329_s15, %s1329_s15 }
  0x1a   :  { %v1346_v44 = vld [vmem:[%s1949_s0 + $0x6] sm:$0x3]  ;;  %v1628_v47 = vpack.c.bf16 %v595_v46, %v594_v45  ;;  %v596_v48 = vld [vmem:[#allocation2 + $0x58] sm:$0xff]  ;;  %v1349_v57 = vld [vmem:[%s1949_s0 + $0x8] sm:$0x3]  ;;  %p1699_p8 = scmp.ne.s32.totalorder %s1329_s15, %s1698_s16  ;;  %p1704_p10 = scmp.lt.s32.totalorder %s1698_s16, %s1698_s16 }
  0x1b   :  { %1599 = vmatpush3.bf16.msra.mxu0 %v1803_v7  ;;  %1605 = vmatpush3.bf16.msra.mxu1 %v1803_v7  ;;  %v750_v58 = vld [vmem:[#allocation2 + $0x60] sm:$0xff]  ;;  %v751_v59 = vld [vmem:[#allocation2 + $0x68] sm:$0xff]  ;;  %v752_v61 = vld [vmem:[#allocation2 + $0x70] sm:$0xff] }
  0x1c   :  { %1606 = vmatprep.subr.bf16.mxu0 %v1727_v0  ;;  %1609 = vmatprep.subr.bf16.mxu1 %v1727_v0  ;;  %v1637_v60 = vpack.c.bf16 %v751_v59, %v750_v58  ;;  %v1352_v10 = vld [vmem:[%s1949_s0 + $0xa] sm:$0x3]  ;;  %v906_v11 = vld [vmem:[#allocation2 + $0x78] sm:$0xff]  ;;  %p1705_p11 = por %p1704_p10, %p1703_p9 }
  0x1d   :  { %v908_v14 = vld [vmem:[#allocation2 + $0x88] sm:$0xff] }
  0x1e   :  { %1443 = vmatmul.mubr.msk.f32.vlgmr.msra.gmra.mrb[0].mxu0 %vm50_vm1, %v43_v8  ;;  %1454 = vmatmul.mubr.msk.f32.vlgmr.msra.gmra.mrb[0].mxu1 %vm50_vm1, %v1339_v9  ;;  %p1706_p12 = pnand %p1705_p11, %p1699_p8 }
  0x1f   :  { %1462 = vmatprep.mubr.msk.f32.mxu0 %vm1728_vm0, %v1729_v1  ;;  %1471 = vmatprep.mubr.msk.f32.mxu1 %vm1728_vm0, %v1729_v1 }
  0x20   :  { %1608 = vmatpush3.bf16.msra.mxu0 %v1607_v12  ;;  %1611 = vmatpush3.bf16.msra.mxu1 %v1610_v15  ;;  %v907_v12 = vld [vmem:[#allocation2 + $0x80] sm:$0xff] }
  0x21   :  { %1460 = vmatprep.subr.mxu0 %v1729_v1  ;;  %1469 = vmatprep.subr.mxu1 %v1729_v1  ;;  %v1646_v13 = vpack.c.bf16 %v907_v12, %v906_v11 }
  0x24   :  { %1461 = vmatpush3.msra.mxu0 %v211_v16  ;;  %1470 = vmatpush3.msra.mxu1 %v129_v17 }
  0x25   :  { %1612 = vmatprep.subr.bf16.mxu0 %v1727_v0  ;;  %1618 = vmatprep.subr.bf16.mxu1 %v1727_v0 }
  0xf1   :  { %v120_v19 = vpop.f32.mrb[0].mxu0  ;;  %v201_v20 = vpop.f32.mrb[0].mxu1 }
  0xf2   :  { %v121_v21 = vadd.f32 %v1830_v18, %v120_v19  ;;  %v202_v22 = vadd.f32 %v1830_v18, %v201_v20  ;;  %v1455_v23 = vpop.f32.mrb[1].mxu1  ;;  %v1444_v24 = vpop.f32.mrb[1].mxu0 }
  0xf3   :  { %v1355_v24 = vld [vmem:[%s1949_s0 + $0xc] sm:$0x3] }
  0xf4   :  { %vm124_vm3 = vcmp.gt.f32.partialorder %v121_v21, 0.0  ;;  %v125_v25 = vmul.f32 0.01, %v121_v21  ;;  %vm205_vm4 = vcmp.gt.f32.partialorder %v202_v22, 0.0  ;;  %v206_v26 = vmul.f32 0.01, %v202_v22 }
  0xf6   :  { %v126_v27 = vsel %vm124_vm3, %v121_v21, %v125_v25  ;;  %v207_v28 = vsel %vm205_vm4, %v202_v22, %v206_v26  ;;  %v1062_v25 = vld [vmem:[#allocation2 + $0x90] sm:$0xff]  ;;  %v1063_v26 = vld [vmem:[#allocation2 + $0x98] sm:$0xff] }
  0xf7   :  { %1463 = vmatmul.mubr.msk.f32.vlgmr.msra.gmra.mrb[2].mxu0 %vm212_vm2, %v207_v28  ;;  %1472 = vmatmul.mubr.msk.f32.vlgmr.msra.gmra.mrb[2].mxu1 %vm212_vm2, %v126_v27  ;;  %v1655_v27 = vpack.c.bf16 %v1063_v26, %v1062_v25  ;;  %v1064_v28 = vld [vmem:[#allocation2 + $0xa0] sm:$0xff] }
  0xf8   :  { %1614 = vmatpush3.bf16.msra.mxu0 %v1796_v5  ;;  %1482 = vmatprep.mubr.msk.f32.mxu0 %vm1728_vm0, %v1729_v1 }
  0xf9   :  { %1615 = vmatprep.subr.bf16.mxu0 %v1727_v0  ;;  %1491 = vmatprep.mubr.msk.f32.mxu1 %vm1728_vm0, %v1729_v1 }
  0xfa   :  { %1620 = vmatpush3.bf16.msra.mxu1 %v1619_v32 }
  0xfb   :  { %1489 = vmatprep.subr.mxu1 %v1729_v1 }
  0xfc   :  { %1617 = vmatpush3.bf16.msra.mxu0 %v1803_v7 }
  0xfd   :  { %1627 = vmatprep.subr.bf16.mxu0 %v1727_v0 }
  0xfe   :  { %1490 = vmatpush3.msra.mxu1 %v440_v33 }
  0xff   :  { %1483 = vmatmul.mubr.msk.f32.vlgmr.msra.gmra.mrb[4].mxu0 %vm50_vm1, %v1343_v29  ;;  %1621 = vmatprep.subr.bf16.mxu1 %v1727_v0 }
 0x100   :  { %1511 = vmatprep.mubr.msk.f32.mxu0 %vm1728_vm0, %v1729_v1  ;;  %1629 = vmatpush3.bf16.msra.mxu0 %v1628_v47 }
 0x101   :  { %1509 = vmatprep.subr.mxu0 %v1729_v1 }
 0x104   :  { %1510 = vmatpush3.msra.mxu0 %v596_v48 }
 0x105   :  { %1630 = vmatprep.subr.bf16.mxu0 %v1727_v0 }
 0x1ca   :  { %v282_v34 = vpop.f32.mrb[2].mxu0  ;;  %v355_v35 = vpop.f32.mrb[2].mxu1 }
 0x1cb   :  { %v356_v36 = vadd.f32 %v355_v35, %v282_v34  ;;  %v1464_v37 = vpop.f32.mrb[3].mxu0  ;;  %v1473_v38 = vpop.f32.mrb[3].mxu1 }
 0x1cc   :  { %v1358_v37 = vld [vmem:[%s1949_s0 + $0xe] sm:$0x3] }
 0x1cd   :  { %v1218_v38 = vld [vmem:[#allocation2 + $0xa8] sm:$0xff] }
 0x1d2   :  { %v430_v39 = vpop.f32.mrb[4].mxu0 }
 0x1d3   :  { %v431_v40 = vadd.f32 %v1830_v18, %v430_v39  ;;  %v1484_v41 = vpop.f32.mrb[5].mxu0  ;;  %v1219_v39 = vld [vmem:[#allocation2 + $0xb0] sm:$0xff] }
 0x1d5   :  { %vm434_vm5 = vcmp.gt.f32.partialorder %v431_v40, 0.0  ;;  %v435_v42 = vmul.f32 0.01, %v431_v40 }
 0x1d7   :  { %v436_v43 = vsel %vm434_vm5, %v431_v40, %v435_v42  ;;  %v1664_v40 = vpack.c.bf16 %v1219_v39, %v1218_v38 }
 0x1d8   :  { %1492 = vmatmul.mubr.msk.f32.vlgmr.msra.gmra.mrb[4].mxu1 %vm212_vm2, %v436_v43 }
 0x1d9   :  { %1623 = vmatpush3.bf16.msra.mxu1 %v1796_v5  ;;  %1502 = vmatprep.mubr.msk.f32.mxu1 %vm1728_vm0, %v1729_v1 }
 0x1da   :  { %1624 = vmatprep.subr.bf16.mxu1 %v1727_v0 }
 0x1dd   :  { %1626 = vmatpush3.bf16.msra.mxu1 %v1803_v7 }
 0x1de   :  { %1636 = vmatprep.subr.bf16.mxu1 %v1727_v0 }
 0x1e0   :  { %1503 = vmatmul.mubr.msk.f32.vlgmr.msra.gmra.mrb[6].mxu1 %vm50_vm1, %v1346_v44 }
 0x1e1   :  { %1531 = vmatprep.mubr.msk.f32.mxu1 %vm1728_vm0, %v1729_v1  ;;  %1638 = vmatpush3.bf16.msra.mxu1 %v1637_v60 }
 0x1e2   :  { %1529 = vmatprep.subr.mxu1 %v1729_v1 }
 0x1e5   :  { %1530 = vmatpush3.msra.mxu1 %v752_v61 }
 0x1e6   :  { %1639 = vmatprep.subr.bf16.mxu1 %v1727_v0 }
 0x2ab   :  { %v510_v49 = vpop.f32.mrb[4].mxu1 }
 0x2ac   :  { %v514_v50 = vadd.f32 %v510_v49, %v356_v36  ;;  %v1493_v51 = vpop.f32.mrb[5].mxu1 }
 0x2ad   :  { %v1361_v51 = vld [vmem:[%s1953_s4] ss:$0 sm:$0xff] }
 0x2b3   :  { %v586_v52 = vpop.f32.mrb[6].mxu1 }
 0x2b4   :  { %v587_v53 = vadd.f32 %v1830_v18, %v586_v52  ;;  %v1504_v54 = vpop.f32.mrb[7].mxu1 }
 0x2b6   :  { %vm590_vm6 = vcmp.gt.f32.partialorder %v587_v53, 0.0  ;;  %v591_v55 = vmul.f32 0.01, %v587_v53 }
 0x2b8   :  { %v592_v56 = vsel %vm590_vm6, %v587_v53, %v591_v55 }
 0x2b9   :  { %1512 = vmatmul.mubr.msk.f32.vlgmr.msra.gmra.mrb[6].mxu0 %vm212_vm2, %v592_v56 }
 0x2ba   :  { %1632 = vmatpush3.bf16.msra.mxu0 %v1796_v5  ;;  %1522 = vmatprep.mubr.msk.f32.mxu0 %vm1728_vm0, %v1729_v1 }
 0x2bb   :  { %1633 = vmatprep.subr.bf16.mxu0 %v1727_v0 }
 0x2be   :  { %1635 = vmatpush3.bf16.msra.mxu0 %v1803_v7 }
 0x2bf   :  { %1645 = vmatprep.subr.bf16.mxu0 %v1727_v0 }
 0x2c1   :  { %1523 = vmatmul.mubr.msk.f32.vlgmr.msra.gmra.mrb[8].mxu0 %vm50_vm1, %v1349_v57 }
 0x2c2   :  { %1551 = vmatprep.mubr.msk.f32.mxu0 %vm1728_vm0, %v1729_v1  ;;  %1647 = vmatpush3.bf16.msra.mxu0 %v1646_v13 }
 0x2c3   :  { %1549 = vmatprep.subr.mxu0 %v1729_v1 }
 0x2c6   :  { %1550 = vmatpush3.msra.mxu0 %v908_v14 }
 0x2c7   :  { %1648 = vmatprep.subr.bf16.mxu0 %v1727_v0 }
 0x38c   :  { %v666_v62 = vpop.f32.mrb[6].mxu0 }
 0x38d   :  { %v670_v63 = vadd.f32 %v666_v62, %v514_v50  ;;  %v1513_v2 = vpop.f32.mrb[7].mxu0 }
 0x394   :  { %v742_v3 = vpop.f32.mrb[8].mxu0 }
 0x395   :  { %v743_v4 = vadd.f32 %v1830_v18, %v742_v3  ;;  %v1524_v6 = vpop.f32.mrb[9].mxu0 }
 0x397   :  { %vm746_vm7 = vcmp.gt.f32.partialorder %v743_v4, 0.0  ;;  %v747_v8 = vmul.f32 0.01, %v743_v4 }
 0x399   :  { %v748_v9 = vsel %vm746_vm7, %v743_v4, %v747_v8 }
 0x39a   :  { %1532 = vmatmul.mubr.msk.f32.vlgmr.msra.gmra.mrb[8].mxu1 %vm212_vm2, %v748_v9 }
 0x39b   :  { %1641 = vmatpush3.bf16.msra.mxu1 %v1796_v5  ;;  %1542 = vmatprep.mubr.msk.f32.mxu1 %vm1728_vm0, %v1729_v1 }
 0x39c   :  { %1642 = vmatprep.subr.bf16.mxu1 %v1727_v0 }
 0x39f   :  { %1644 = vmatpush3.bf16.msra.mxu1 %v1803_v7 }
 0x3a0   :  { %1654 = vmatprep.subr.bf16.mxu1 %v1727_v0 }
 0x3a2   :  { %1543 = vmatmul.mubr.msk.f32.vlgmr.msra.gmra.mrb[10].mxu1 %vm50_vm1, %v1352_v10 }
 0x3a3   :  { %1571 = vmatprep.mubr.msk.f32.mxu1 %vm1728_vm0, %v1729_v1  ;;  %1656 = vmatpush3.bf16.msra.mxu1 %v1655_v27 }
 0x3a4   :  { %1569 = vmatprep.subr.mxu1 %v1729_v1 }
 0x3a7   :  { %1570 = vmatpush3.msra.mxu1 %v1064_v28 }
 0x3a8   :  { %1657 = vmatprep.subr.bf16.mxu1 %v1727_v0 }
 0x46d   :  { %v822_v15 = vpop.f32.mrb[8].mxu1 }
 0x46e   :  { %v826_v16 = vadd.f32 %v822_v15, %v670_v63  ;;  %v1533_v17 = vpop.f32.mrb[9].mxu1 }
 0x475   :  { %v898_v19 = vpop.f32.mrb[10].mxu1 }
 0x476   :  { %v899_v20 = vadd.f32 %v1830_v18, %v898_v19  ;;  %v1544_v21 = vpop.f32.mrb[11].mxu1 }
 0x478   :  { %vm902_vm8 = vcmp.gt.f32.partialorder %v899_v20, 0.0  ;;  %v903_v22 = vmul.f32 0.01, %v899_v20 }
 0x47a   :  { %v904_v23 = vsel %vm902_vm8, %v899_v20, %v903_v22 }
 0x47b   :  { %1552 = vmatmul.mubr.msk.f32.vlgmr.msra.gmra.mrb[10].mxu0 %vm212_vm2, %v904_v23 }
 0x47c   :  { %1650 = vmatpush3.bf16.msra.mxu0 %v1796_v5  ;;  %1562 = vmatprep.mubr.msk.f32.mxu0 %vm1728_vm0, %v1729_v1 }
 0x47d   :  { %1651 = vmatprep.subr.bf16.mxu0 %v1727_v0 }
 0x480   :  { %1653 = vmatpush3.bf16.msra.mxu0 %v1803_v7 }
 0x481   :  { %1663 = vmatprep.subr.bf16.mxu0 %v1727_v0 }
 0x483   :  { %1563 = vmatmul.mubr.msk.f32.vlgmr.msra.gmra.mrb[12].mxu0 %vm50_vm1, %v1355_v24 }
 0x484   :  { %1591 = vmatprep.mubr.msk.f32.mxu0 %vm1728_vm0, %v1729_v1  ;;  %1665 = vmatpush3.bf16.msra.mxu0 %v1664_v40 }
 0x485   :  { %1589 = vmatprep.subr.mxu0 %v1729_v1 }
 0x54e   :  { %v978_v29 = vpop.f32.mrb[10].mxu0 }
 0x54f   :  { %v982_v30 = vadd.f32 %v978_v29, %v826_v16  ;;  %v1553_v31 = vpop.f32.mrb[11].mxu0 }
 0x556   :  { %v1054_v32 = vpop.f32.mrb[12].mxu0 }
 0x557   :  { %v1055_v33 = vadd.f32 %v1830_v18, %v1054_v32  ;;  %v1564_v34 = vpop.f32.mrb[13].mxu0 }
 0x559   :  { %vm1058_vm9 = vcmp.gt.f32.partialorder %v1055_v33, 0.0  ;;  %v1059_v35 = vmul.f32 0.01, %v1055_v33 }
 0x55b   :  { %v1060_v36 = vsel %vm1058_vm9, %v1055_v33, %v1059_v35 }
 0x55c   :  { %1572 = vmatmul.mubr.msk.f32.vlgmr.msra.gmra.mrb[12].mxu1 %vm212_vm2, %v1060_v36 }
 0x55d   :  { %1659 = vmatpush3.bf16.msra.mxu1 %v1796_v5  ;;  %1582 = vmatprep.mubr.msk.f32.mxu1 %vm1728_vm0, %v1729_v1  ;;  %v1220_v5 = vld [vmem:[#allocation2 + $0xb8] sm:$0xff] }
 0x55e   :  { %1660 = vmatprep.subr.bf16.mxu1 %v1727_v0  ;;  %1590 = vmatpush3.msra.mxu0 %v1220_v5  ;;  %v1295_v0 = vld [vmem:[%s1954_s5] sm:$0x3] }
 0x55f   :  { %1297 = vrot.lane.b32.xlu0 %v1295_v0, %s1730_s12  ;;  %1303 = vrot.lane.b32.xlu1 %v1295_v0, %s1731_s3 }
 0x561   :  { %1662 = vmatpush3.bf16.msra.mxu1 %v1803_v7 }
 0x563   :  { %1300 = vrot.lane.b32.xlu0 %v1295_v0, %s1732_s13 }
 0x564   :  { %1583 = vmatmul.mubr.msk.f32.vlgmr.msra.gmra.mrb[14].mxu1 %vm50_vm1, %v1358_v37 }
 0x5d1   :  { %v1298_v47 = vpop.permute.xlu0 %1297  ;;  %v1304_v53 = vpop.permute.xlu1 %1303 }
 0x5d2   :  { %v1306_v48 = vsel %vm212_vm2, %v1295_v0, %v1298_v47 }
 0x5d5   :  { %v1301_v49 = vpop.permute.xlu0 %1300 }
 0x5d6   :  { %v1308_v52 = vsel %vm1307_vm11, %v1306_v48, %v1301_v49 }
 0x5d7   :  { %v1310_v56 = vsel %vm1309_vm12, %v1308_v52, %v1304_v53 }
 0x62f   :  { %v1134_v7 = vpop.f32.mrb[12].mxu1 }
 0x630   :  { %v1138_v41 = vadd.f32 %v1134_v7, %v982_v30  ;;  %v1573_v42 = vpop.f32.mrb[13].mxu1 }
 0x637   :  { %v1210_v43 = vpop.f32.mrb[14].mxu1 }
 0x638   :  { %v1211_v44 = vadd.f32 %v1830_v18, %v1210_v43  ;;  %v1584_v45 = vpop.f32.mrb[15].mxu1 }
 0x63a   :  { %vm1214_vm10 = vcmp.gt.f32.partialorder %v1211_v44, 0.0  ;;  %v1215_v1 = vmul.f32 0.01, %v1211_v44 }
 0x63c   :  { %v1216_v46 = vsel %vm1214_vm10, %v1211_v44, %v1215_v1 }
 0x63d   :  { %1592 = vmatmul.mubr.msk.f32.vlgmr.msra.gmra.mrb[14].mxu0 %vm212_vm2, %v1216_v46 }
 0x710   :  { %v1290_v50 = vpop.f32.mrb[14].mxu0 }
 0x711   :  { %v1294_v18 = vadd.f32 %v1290_v50, %v1138_v41  ;;  %v1593_v54 = vpop.f32.mrb[15].mxu0 }
 0x713   :  { %v1318_v55 = vadd.f32 %v1361_v51, %v1294_v18 }
 0x715   :  { %v1319_v57 = vadd.f32 %v1318_v55, %v1310_v56 }
 0x717   :  { %1321 = vst.msk [vmem:[#allocation5] sm:$0x3] %vm1320_vm13, %v1319_v57 }
 0x718   :  { %1709 = shalt.err (!%p1706_p12)
}
 0x719   :  { %s1710_s18 = scalar_lea.hbm %s1955_s6, 32 }
 0x71a   :  { %p1711_p13 = scmp.ne.s32.totalorder %s1955_s6, %s1710_s18  ;;  %p1714_p0 = scmp.lt.u32.totalorder %s1710_s18, %s1955_s6 }
 0x71c   :  { %p1716_p1 = pnand %p1714_p0, %p1711_p13 }
 0x71e   :  { %1719 = shalt.err (!%p1716_p1)
}
 0x71f   :  { %1331 = dma.vmem_to_hbm [thread:$0]  %s1329_s15, 32, %s1955_s6, [#allocation4]  }
 0x720   :  { %1722 = dma.done.wait [#allocation4], 32  }
 0x721   :  { %1723 = vsyncadd [#allocation4], 4294967264 }
 0x722   :  { %1335 = vsyncpa [#allocation3], 1 }
 0x723   :  { %1336 = vsyncpa [#allocation4], 1 }

</bundles_post_ra>
